<compile_context>
chip_gen: v5e
topology: v5e:2x2
jax: 0.10.0
libtpu: 0.0.40
codegen_flags: <defaults>
</compile_context>

<pallas_src>
import jax
import jax.numpy as jnp
from jax.experimental import pallas as pl
from jax.experimental.pallas import tpu as pltpu

_LANE = 128  # vreg lane width / MXU-friendly feature width


def _round_up(n, m):
    return ((n + m - 1) // m) * m


def _qnet_kernel(x_ref, w1_ref, b1_ref, w2_ref, b2_ref, w3_ref, b3_ref, o_ref):
    # One batch tile per grid step: three MXU matmuls with VPU ReLU in between.
    # Feature dims are lane-padded to 128 for the matmuls; the final result is
    # sliced to the true (narrow) output width before the store, so only
    # out_size lanes per row go back to HBM.
    x = x_ref[...]

    h1 = jnp.dot(x, w1_ref[...], preferred_element_type=jnp.float32) + b1_ref[...]
    h1 = jnp.maximum(h1, 0.0)

    h2 = jnp.dot(h1, w2_ref[...], preferred_element_type=jnp.float32) + b2_ref[...]
    h2 = jnp.maximum(h2, 0.0)

    h3 = jnp.dot(h2, w3_ref[...], preferred_element_type=jnp.float32) + b3_ref[...]
    o_ref[...] = h3[:, : o_ref.shape[1]].astype(o_ref.dtype)


@jax.jit
def qnetwork_forward(x, params):
    """Fused QNetwork forward pass.

    x:       (batch, input_size) float32
    params:  dict with w1 (in,64), b1 (1,64), w2 (64,32), b2 (1,32),
             w3 (32,out), b3 (1,out)   [natural / PyTorch-matching shapes]
    returns: (batch, output_size) float32
    """
    w1, b1 = params["w1"], params["b1"]
    w2, b2 = params["w2"], params["b2"]
    w3, b3 = params["w3"], params["b3"]

    in_size = w1.shape[0]
    h1_size, h2_size, out_size = w1.shape[1], w2.shape[1], w3.shape[1]

    # Lane-pad hidden / output feature dims to 128 for full-width MXU passes.
    # Zero padding is exact (ReLU(0)=0, zero weight/bias columns); the padded
    # layer-3 columns are discarded by the in-kernel slice before the store.
    h1p = _round_up(h1_size, _LANE)
    h2p = _round_up(h2_size, _LANE)
    outp = _round_up(out_size, _LANE)

    w1p = jnp.pad(w1, ((0, 0), (0, h1p - h1_size)))
    b1p = jnp.pad(b1, ((0, 0), (0, h1p - h1_size)))
    w2p = jnp.pad(w2, ((0, h1p - h1_size), (0, h2p - h2_size)))
    b2p = jnp.pad(b2, ((0, 0), (0, h2p - h2_size)))
    w3p = jnp.pad(w3, ((0, h2p - h2_size), (0, outp - out_size)))
    b3p = jnp.pad(b3, ((0, 0), (0, outp - out_size)))

    # Batch tiling: no wrapper-side batch padding — Pallas handles the ragged
    # last block. TB is a multiple of 8 (sublane), capped at 2048 rows, and
    # chosen so that batch > 8 yields >= 2 grid tiles (v7x megacore sharding).
    batch = x.shape[0]
    TB = _round_up(max(pl.cdiv(batch, 2), 1), 8)
    TB = max(8, min(TB, 2048))
    grid = (pl.cdiv(batch, TB),)

    out = pl.pallas_call(
        _qnet_kernel,
        out_shape=jax.ShapeDtypeStruct((batch, out_size), jnp.float32),
        grid=grid,
        in_specs=[
            pl.BlockSpec((TB, in_size), lambda i: (i, 0)),      # x: tiled over batch
            pl.BlockSpec((in_size, h1p), lambda i: (0, 0)),     # weights/biases:
            pl.BlockSpec((1, h1p), lambda i: (0, 0)),           # VMEM-resident
            pl.BlockSpec((h1p, h2p), lambda i: (0, 0)),         # across all steps
            pl.BlockSpec((1, h2p), lambda i: (0, 0)),
            pl.BlockSpec((h2p, outp), lambda i: (0, 0)),
            pl.BlockSpec((1, outp), lambda i: (0, 0)),
        ],
        out_specs=pl.BlockSpec((TB, out_size), lambda i: (i, 0)),  # narrow output
        compiler_params=pltpu.CompilerParams(
            dimension_semantics=("parallel",),
        ),
    )(x, w1p, b1p, w2p, b2p, w3p, b3p)

    return out


def init_qnetwork_params(key, input_size, output_size):
    """Deterministic init matching PyTorch nn.Linear default:
    U(-1/sqrt(fan_in), 1/sqrt(fan_in)) for both weights and biases.
    Weights stored as (in_features, out_features)."""
    sizes = [(input_size, 64), (64, 32), (32, output_size)]
    params = {}
    for i, (fan_in, fan_out) in enumerate(sizes, start=1):
        key, kw, kb = jax.random.split(key, 3)
        bound = 1.0 / jnp.sqrt(jnp.float32(fan_in))
        params[f"w{i}"] = jax.random.uniform(
            kw, (fan_in, fan_out), jnp.float32, minval=-bound, maxval=bound
        )
        params[f"b{i}"] = jax.random.uniform(
            kb, (1, fan_out), jnp.float32, minval=-bound, maxval=bound
        )
    return params


def _reference_forward(x, params):
    # Pure-JAX reference for correctness checking.
    h1 = jnp.maximum(x @ params["w1"] + params["b1"], 0.0)
    h2 = jnp.maximum(h1 @ params["w2"] + params["b2"], 0.0)
    return h2 @ params["w3"] + params["b3"]


if __name__ == "__main__":
    key = jax.random.PRNGKey(0)
    key, kx = jax.random.split(key)

    batch = 8
    input_size = 16   # e.g. a small flattened game-state vector
    output_size = 4   # e.g. number of discrete actions

    params = init_qnetwork_params(key, input_size, output_size)
    x = jax.random.normal(kx, (batch, input_size), dtype=jnp.float32)

    out = qnetwork_forward(x, params)
    jax.block_until_ready(out)

    ref = _reference_forward(x, params)
    assert out.shape == (batch, output_size)
    assert jnp.allclose(out, ref, atol=1e-5, rtol=1e-5), "mismatch vs JAX reference"

    # Larger batch that is NOT a multiple of the tile: exercises the ragged
    # last block (masked tail) and the >=2-tile path (megacore on v7x).
    key, kx2 = jax.random.split(key)
    x_big = jax.random.normal(kx2, (2048 + 24, input_size), dtype=jnp.float32)
    out_big = qnetwork_forward(x_big, params)
    jax.block_until_ready(out_big)
    ref_big = _reference_forward(x_big, params)
    assert out_big.shape == (x_big.shape[0], output_size)
    assert jnp.allclose(out_big, ref_big, atol=1e-4, rtol=1e-4), "mismatch (big batch)"

    print("KERNEL_OK")
</pallas_src>

<mosaic_0001>
module attributes {stable_mosaic.version = 11 : i64} {
  func.func @_qnet_kernel(%arg0: i32, %arg1: memref<8x16xf32, #tpu.memory_space<vmem>>, %arg2: memref<16x128xf32, #tpu.memory_space<vmem>>, %arg3: memref<1x128xf32, #tpu.memory_space<vmem>>, %arg4: memref<128x128xf32, #tpu.memory_space<vmem>>, %arg5: memref<1x128xf32, #tpu.memory_space<vmem>>, %arg6: memref<128x128xf32, #tpu.memory_space<vmem>>, %arg7: memref<1x128xf32, #tpu.memory_space<vmem>>, %arg8: memref<8x4xf32, #tpu.memory_space<vmem>>) attributes {dimension_semantics = [#tpu.dimension_semantics<parallel>], iteration_bounds = array<i64: 1>, scalar_prefetch = 0 : i64, scratch_operands = 0 : i64, tpu.core_type = #tpu.core_type<tc>, window_params = [{transform_indices = @transform_0, window_bounds = array<i64: 8, 16>}, {pipeline_mode = #tpu.pipeline_mode<synchronous>, transform_indices = @transform_1, window_bounds = array<i64: 16, 128>}, {pipeline_mode = #tpu.pipeline_mode<synchronous>, transform_indices = @transform_2, window_bounds = array<i64: 1, 128>}, {pipeline_mode = #tpu.pipeline_mode<synchronous>, transform_indices = @transform_3, window_bounds = array<i64: 128, 128>}, {pipeline_mode = #tpu.pipeline_mode<synchronous>, transform_indices = @transform_4, window_bounds = array<i64: 1, 128>}, {pipeline_mode = #tpu.pipeline_mode<synchronous>, transform_indices = @transform_5, window_bounds = array<i64: 128, 128>}, {pipeline_mode = #tpu.pipeline_mode<synchronous>, transform_indices = @transform_6, window_bounds = array<i64: 1, 128>}, {transform_indices = @transform_7, window_bounds = array<i64: 8, 4>}]} {
    %c0 = arith.constant 0 : index
    %c0_0 = arith.constant 0 : index
    %0 = vector.load %arg1[%c0, %c0_0] : memref<8x16xf32, #tpu.memory_space<vmem>>, vector<8x16xf32>
    %c0_1 = arith.constant 0 : index
    %c0_2 = arith.constant 0 : index
    %1 = vector.load %arg2[%c0_1, %c0_2] : memref<16x128xf32, #tpu.memory_space<vmem>>, vector<16x128xf32>
    %cst = arith.constant dense<0.000000e+00> : vector<8x128xf32>
    %2 = tpu.matmul %0, %1, %cst {dimension_numbers = #tpu.dot_dimension_numbers<[1], [0], [0], [1], [0, 0, 1, 1], [], []>} : vector<8x16xf32>, vector<16x128xf32>, vector<8x128xf32> -> vector<8x128xf32>
    %c0_3 = arith.constant 0 : index
    %c0_4 = arith.constant 0 : index
    %3 = vector.load %arg3[%c0_3, %c0_4] : memref<1x128xf32, #tpu.memory_space<vmem>>, vector<1x128xf32>
    %4 = vector.broadcast %3 : vector<1x128xf32> to vector<8x128xf32>
    %5 = arith.addf %2, %4 : vector<8x128xf32>
    %cst_5 = arith.constant 0.000000e+00 : f32
    %6 = vector.broadcast %cst_5 : f32 to vector<8x128xf32>
    %7 = arith.maximumf %5, %6 : vector<8x128xf32>
    %c0_6 = arith.constant 0 : index
    %c0_7 = arith.constant 0 : index
    %8 = vector.load %arg4[%c0_6, %c0_7] : memref<128x128xf32, #tpu.memory_space<vmem>>, vector<128x128xf32>
    %cst_8 = arith.constant dense<0.000000e+00> : vector<8x128xf32>
    %9 = tpu.matmul %7, %8, %cst_8 {dimension_numbers = #tpu.dot_dimension_numbers<[1], [0], [0], [1], [0, 0, 1, 1], [], []>} : vector<8x128xf32>, vector<128x128xf32>, vector<8x128xf32> -> vector<8x128xf32>
    %c0_9 = arith.constant 0 : index
    %c0_10 = arith.constant 0 : index
    %10 = vector.load %arg5[%c0_9, %c0_10] : memref<1x128xf32, #tpu.memory_space<vmem>>, vector<1x128xf32>
    %11 = vector.broadcast %10 : vector<1x128xf32> to vector<8x128xf32>
    %12 = arith.addf %9, %11 : vector<8x128xf32>
    %cst_11 = arith.constant 0.000000e+00 : f32
    %13 = vector.broadcast %cst_11 : f32 to vector<8x128xf32>
    %14 = arith.maximumf %12, %13 : vector<8x128xf32>
    %c0_12 = arith.constant 0 : index
    %c0_13 = arith.constant 0 : index
    %15 = vector.load %arg6[%c0_12, %c0_13] : memref<128x128xf32, #tpu.memory_space<vmem>>, vector<128x128xf32>
    %cst_14 = arith.constant dense<0.000000e+00> : vector<8x128xf32>
    %16 = tpu.matmul %14, %15, %cst_14 {dimension_numbers = #tpu.dot_dimension_numbers<[1], [0], [0], [1], [0, 0, 1, 1], [], []>} : vector<8x128xf32>, vector<128x128xf32>, vector<8x128xf32> -> vector<8x128xf32>
    %c0_15 = arith.constant 0 : index
    %c0_16 = arith.constant 0 : index
    %17 = vector.load %arg7[%c0_15, %c0_16] : memref<1x128xf32, #tpu.memory_space<vmem>>, vector<1x128xf32>
    %18 = vector.broadcast %17 : vector<1x128xf32> to vector<8x128xf32>
    %19 = arith.addf %16, %18 : vector<8x128xf32>
    %20 = vector.extract_strided_slice %19 {offsets = [0, 0], sizes = [8, 4], strides = [1, 1]} : vector<8x128xf32> to vector<8x4xf32>
    %c0_17 = arith.constant 0 : index
    %c0_18 = arith.constant 0 : index
    %21 = vector.load %arg8[%c0_17, %c0_18] : memref<8x4xf32, #tpu.memory_space<vmem>>, vector<8x4xf32>
    tpu.vector_store %arg8[%c0_17, %c0_18], %20 {strides = array<i32>} : memref<8x4xf32, #tpu.memory_space<vmem>>, vector<8x4xf32>,
    return
  }
  func.func @transform_0(%arg0: i32) -> (i32, i32) {
    %c0_i32 = arith.constant 0 : i32
    %c0_i32_0 = arith.constant 0 : i32
    return %arg0, %c0_i32 : i32, i32
  }
  func.func @transform_1(%arg0: i32) -> (i32, i32) {
    %c0_i32 = arith.constant 0 : i32
    %c0_i32_0 = arith.constant 0 : i32
    %c0_i32_1 = arith.constant 0 : i32
    return %c0_i32, %c0_i32_0 : i32, i32
  }
  func.func @transform_2(%arg0: i32) -> (i32, i32) {
    %c0_i32 = arith.constant 0 : i32
    %c0_i32_0 = arith.constant 0 : i32
    %c0_i32_1 = arith.constant 0 : i32
    return %c0_i32, %c0_i32_0 : i32, i32
  }
  func.func @transform_3(%arg0: i32) -> (i32, i32) {
    %c0_i32 = arith.constant 0 : i32
    %c0_i32_0 = arith.constant 0 : i32
    %c0_i32_1 = arith.constant 0 : i32
    return %c0_i32, %c0_i32_0 : i32, i32
  }
  func.func @transform_4(%arg0: i32) -> (i32, i32) {
    %c0_i32 = arith.constant 0 : i32
    %c0_i32_0 = arith.constant 0 : i32
    %c0_i32_1 = arith.constant 0 : i32
    return %c0_i32, %c0_i32_0 : i32, i32
  }
  func.func @transform_5(%arg0: i32) -> (i32, i32) {
    %c0_i32 = arith.constant 0 : i32
    %c0_i32_0 = arith.constant 0 : i32
    %c0_i32_1 = arith.constant 0 : i32
    return %c0_i32, %c0_i32_0 : i32, i32
  }
  func.func @transform_6(%arg0: i32) -> (i32, i32) {
    %c0_i32 = arith.constant 0 : i32
    %c0_i32_0 = arith.constant 0 : i32
    %c0_i32_1 = arith.constant 0 : i32
    return %c0_i32, %c0_i32_0 : i32, i32
  }
  func.func @transform_7(%arg0: i32) -> (i32, i32) {
    %c0_i32 = arith.constant 0 : i32
    %c0_i32_0 = arith.constant 0 : i32
    return %arg0, %c0_i32 : i32, i32
  }
}

</mosaic_0001>

<bundles_post_ra>
// kernel: qnetwork_forward.1
= control target key start
LH: loop header
LB: loop body
LE: loop exit
PB: predicated region body
PF: predicated region fallthrough
CT: control target
= control target key end

     0   :  { %vm33_vm0 = vcmask 130048   ;;  %vm139_vm1 = vcmask 31744   ;;  %s306_s1 = inlined_call_operand.vmem [shape: f32[16,128], index: 1, kind: input, shape index: {}]   ;;  %s307_s0 = inlined_call_operand.vmem [shape: f32[8,16], index: 0, kind: input, shape index: {}]   ;;  %s308_s3 = inlined_call_operand.vmem [shape: f32[128,128], index: 3, kind: input, shape index: {}]   ;;  %s309_s2 = inlined_call_operand.vmem [shape: f32[1,128], index: 2, kind: input, shape index: {}]   ;;  %s310_s4 = inlined_call_operand.vmem [shape: f32[1,128], index: 4, kind: input, shape index: {}]   ;;  %s311_s5 = inlined_call_operand.vmem [shape: f32[128,128], index: 5, kind: input, shape index: {}]   ;;  %s312_s6 = inlined_call_operand.vmem [shape: f32[1,128], index: 6, kind: input, shape index: {}]   ;;  %s313_s7 = inlined_call_operand.vmem [shape: f32[8,4], index: 7, kind: output, shape index: {}]  }
   0x1   :  { %v28_v0 = vld [vmem:[%s306_s1 + $0x8] sm:$0xff]  ;;  %v27_v1 = vld [vmem:[%s306_s1] sm:$0xff]  ;;  %v73_v3 = vld [vmem:[%s308_s3 + $0x78] sm:$0xff] }
   0x2   :  { %51 = vmatpush.msra.mxu0 %v28_v0  ;;  %v26_v2 = vld [vmem:[%s307_s0] sm:$0xff]  ;;  %v72_v4 = vld [vmem:[%s308_s3 + $0x70] sm:$0xff]  ;;  %78 = vmatpush.msra.mxu1 %v73_v3  ;;  %v71_v5 = vld [vmem:[%s308_s3 + $0x68] sm:$0xff] }
   0x3   :  { %v70_v6 = vld [vmem:[%s308_s3 + $0x60] sm:$0xff]  ;;  %v69_v7 = vld [vmem:[%s308_s3 + $0x58] sm:$0xff]  ;;  %v68_v8 = vld [vmem:[%s308_s3 + $0x50] sm:$0xff] }
   0x4   :  { %52 = vmatpush.msra.mxu0 %v27_v1  ;;  %79 = vmatpush.msra.mxu1 %v72_v4  ;;  %v67_v9 = vld [vmem:[%s308_s3 + $0x48] sm:$0xff]  ;;  %v66_v10 = vld [vmem:[%s308_s3 + $0x40] sm:$0xff]  ;;  %v65_v11 = vld [vmem:[%s308_s3 + $0x38] sm:$0xff] }
   0x5   :  { %145 = vmatmul.msk.f32.vlgmr.msra.gmra.mxu0 %vm33_vm0, %v26_v2  ;;  %v64_v12 = vld [vmem:[%s308_s3 + $0x30] sm:$0xff]  ;;  %v63_v13 = vld [vmem:[%s308_s3 + $0x28] sm:$0xff]  ;;  %v62_v14 = vld [vmem:[%s308_s3 + $0x20] sm:$0xff] }
   0x6   :  { %80 = vmatpush.msra.mxu1 %v71_v5  ;;  %v61_v15 = vld [vmem:[%s308_s3 + $0x18] sm:$0xff]  ;;  %v60_v16 = vld [vmem:[%s308_s3 + $0x10] sm:$0xff]  ;;  %v59_v17 = vld [vmem:[%s308_s3 + $0x8] sm:$0xff] }
   0x7   :  { %v58_v18 = vld [vmem:[%s308_s3] sm:$0xff]  ;;  %v114_v19 = vld [vmem:[%s311_s5 + $0x78] sm:$0xff]  ;;  %v113_v20 = vld [vmem:[%s311_s5 + $0x70] sm:$0xff] }
   0x8   :  { %81 = vmatpush.msra.mxu1 %v70_v6  ;;  %119 = vmatpush.msra.mxu2 %v114_v19  ;;  %v112_v21 = vld [vmem:[%s311_s5 + $0x68] sm:$0xff]  ;;  %v111_v22 = vld [vmem:[%s311_s5 + $0x60] sm:$0xff]  ;;  %v110_v23 = vld [vmem:[%s311_s5 + $0x58] sm:$0xff] }
   0x9   :  { %v109_v24 = vld [vmem:[%s311_s5 + $0x50] sm:$0xff]  ;;  %v108_v25 = vld [vmem:[%s311_s5 + $0x48] sm:$0xff]  ;;  %v107_v26 = vld [vmem:[%s311_s5 + $0x40] sm:$0xff] }
   0xa   :  { %82 = vmatpush.msra.mxu1 %v69_v7  ;;  %120 = vmatpush.msra.mxu2 %v113_v20  ;;  %v106_v27 = vld [vmem:[%s311_s5 + $0x38] sm:$0xff]  ;;  %v105_v28 = vld [vmem:[%s311_s5 + $0x30] sm:$0xff]  ;;  %v104_v29 = vld [vmem:[%s311_s5 + $0x28] sm:$0xff] }
   0xb   :  { %v103_v30 = vld [vmem:[%s311_s5 + $0x20] sm:$0xff]  ;;  %v102_v31 = vld [vmem:[%s311_s5 + $0x18] sm:$0xff]  ;;  %v101_v36 = vld [vmem:[%s311_s5 + $0x10] sm:$0xff] }
   0xc   :  { %83 = vmatpush.msra.mxu1 %v68_v8  ;;  %121 = vmatpush.msra.mxu2 %v112_v21  ;;  %v146_v32 = vld [vmem:[%s309_s2] ss:$0 sm:$0xff]  ;;  %v100_v37 = vld [vmem:[%s311_s5 + $0x8] sm:$0xff] }
   0xd   :  { %v99_v38 = vld [vmem:[%s311_s5] sm:$0xff] }
   0xe   :  { %84 = vmatpush.msra.mxu1 %v67_v9  ;;  %122 = vmatpush.msra.mxu2 %v111_v22  ;;  %v147_v39 = vld [vmem:[%s310_s4] ss:$0 sm:$0xff] }
   0xf   :  { %v148_v43 = vld [vmem:[%s312_s6] ss:$0 sm:$0xff] }
  0x10   :  { %85 = vmatpush.msra.mxu1 %v66_v10  ;;  %123 = vmatpush.msra.mxu2 %v110_v23 }
  0x12   :  { %86 = vmatpush.msra.mxu1 %v65_v11  ;;  %124 = vmatpush.msra.mxu2 %v109_v24 }
  0x14   :  { %87 = vmatpush.msra.mxu1 %v64_v12  ;;  %125 = vmatpush.msra.mxu2 %v108_v25 }
  0x16   :  { %88 = vmatpush.msra.mxu1 %v63_v13  ;;  %126 = vmatpush.msra.mxu2 %v107_v26 }
  0x18   :  { %89 = vmatpush.msra.mxu1 %v62_v14  ;;  %127 = vmatpush.msra.mxu2 %v106_v27 }
  0x1a   :  { %90 = vmatpush.msra.mxu1 %v61_v15  ;;  %128 = vmatpush.msra.mxu2 %v105_v28 }
  0x1c   :  { %91 = vmatpush.msra.mxu1 %v60_v16  ;;  %129 = vmatpush.msra.mxu2 %v104_v29 }
  0x1e   :  { %92 = vmatpush.msra.mxu1 %v59_v17  ;;  %130 = vmatpush.msra.mxu2 %v103_v30 }
  0x20   :  { %93 = vmatpush.msra.mxu1 %v58_v18  ;;  %131 = vmatpush.msra.mxu2 %v102_v31 }
  0x22   :  { %132 = vmatpush.msra.mxu2 %v101_v36 }
  0x24   :  { %133 = vmatpush.msra.mxu2 %v100_v37 }
  0x26   :  { %134 = vmatpush.msra.mxu2 %v99_v38 }
  0x82   :  { %v54_v33 = vpop.f32.mrf.mxu0 }
  0x83   :  { %v55_v34 = vadd.f32 %v146_v32, %v54_v33 }
  0x85   :  { %v57_v35 = vmax.f32 %v55_v34, 0.0 }
  0x87   :  { %94 = vmatmul.f32.vlgmr.msra.gmra.mxu1 %v57_v35 }
 0x104   :  { %v95_v40 = vpop.f32.mrf.mxu1 }
 0x105   :  { %v96_v41 = vadd.f32 %v147_v39, %v95_v40 }
 0x107   :  { %v98_v42 = vmax.f32 %v96_v41, 0.0 }
 0x109   :  { %135 = vmatmul.f32.vlgmr.msra.gmra.mxu2 %v98_v42 }
 0x18c   :  { %v136_v44 = vpop.f32.mrf.mxu2 }
 0x18d   :  { %v137_v45 = vadd.f32 %v148_v43, %v136_v44 }
 0x18f   :  { %140 = vst.msk [vmem:[%s313_s7] sm:$0xff] %vm139_vm1, %v137_v45 }

</bundles_post_ra>
